<compile_context>
chip_gen: v7x
topology: tpu7x:2x2x1
jax: 0.10.0
libtpu: 0.0.40
codegen_flags: <defaults>
</compile_context>

<pallas_src>
import jax
import jax.numpy as jnp
from jax.experimental import pallas as pl
from jax.experimental.pallas import tpu as pltpu


_LANE = 128
_SUBLANE = 8
# Per-block byte budget.  With double-buffered input AND output the resident
# VMEM working set is ~4x this value: 4 MiB/block -> ~16 MiB, which fits the
# default scoped limits of v5e (16 MiB, raised below), v6e (32 MiB) and v7x
# (32 MiB scoped / 64 MiB physical).
_MAX_BLOCK_BYTES = 4 * 1024 * 1024


def _copy_kernel(x_ref, o_ref):
    # Pass-through: the module defines no computation.
    o_ref[...] = x_ref[...]


def _pick_lane_dense_layout(total_elems):
    """Factor `total_elems` as (rows, cols) with cols a multiple of 128.

    Prefers rows that are a multiple of 8 (sublane-aligned) and the widest
    lane extent available.  Returns None if no multiple-of-128 factorization
    exists (caller falls back to a single full-array block).
    """
    for cols in (1024, 512, 256, 128):
        if total_elems % cols == 0 and (total_elems // cols) % _SUBLANE == 0:
            return total_elems // cols, cols
    for cols in (1024, 512, 256, 128):
        if total_elems % cols == 0:
            return total_elems // cols, cols
    return None


@jax.jit
def custom_head_forward(x: jax.Array) -> jax.Array:
    """Pallas equivalent of CustomHead.forward (identity placeholder).

    Args:
      x: array of shape (N, C, H, W) (any shape works), any float dtype.
    Returns:
      array identical to x (same shape / dtype).
    """
    orig_shape = x.shape
    total = x.size
    itemsize = jnp.dtype(x.dtype).itemsize

    layout = _pick_lane_dense_layout(total)
    if layout is None:
        # Rare fallback (total not divisible by 128): single full-array block,
        # which is exempt from the (8, 128) divisibility rule.
        x2d = x.reshape(-1, orig_shape[-1])
        rows, cols = x2d.shape
        tile_rows = rows
    else:
        rows, cols = layout
        x2d = x.reshape(rows, cols)
        # Largest multiple-of-8 row tile within the per-block byte budget.
        max_rows = max(
            _SUBLANE,
            (_MAX_BLOCK_BYTES // (cols * itemsize)) // _SUBLANE * _SUBLANE,
        )
        tile_rows = rows if rows <= max_rows else max_rows

    grid = (pl.cdiv(rows, tile_rows),)

    out2d = pl.pallas_call(
        _copy_kernel,
        out_shape=jax.ShapeDtypeStruct((rows, cols), x.dtype),
        grid_spec=pltpu.PrefetchScalarGridSpec(
            num_scalar_prefetch=0,
            grid=grid,
            in_specs=[pl.BlockSpec((tile_rows, cols), lambda i: (i, 0))],
            out_specs=pl.BlockSpec((tile_rows, cols), lambda i: (i, 0)),
        ),
        # Identity: output aliases the input buffer -> no extra HBM allocation.
        input_output_aliases={0: 0},
        compiler_params=pltpu.CompilerParams(
            # Independent row tiles: shard across both TensorCores on v7x;
            # harmless on single-TC v5e/v6e.
            dimension_semantics=("parallel",),
            # Explicit scoped-VMEM budget (also raises v5e's 16 MiB default).
            vmem_limit_bytes=32 * 1024 * 1024,
        ),
    )(x2d)

    return out2d.reshape(orig_shape)


if __name__ == "__main__":
    key = jax.random.PRNGKey(0)
    # Small NCHW input consistent with a conv-style head: batch=2, C=4, 16x16.
    x = jax.random.normal(key, (2, 4, 16, 16), dtype=jnp.float32)

    y = custom_head_forward(x)
    y = jax.block_until_ready(y)

    # Identity semantics check (the only well-defined shape/dtype behavior of
    # the module, since forward() is unimplemented upstream).
    assert y.shape == x.shape
    assert y.dtype == x.dtype
    assert bool(jnp.allclose(y, x))

    print("KERNEL_OK")
</pallas_src>

<mosaic_0001>
module attributes {stable_mosaic.version = 11 : i64} {
  func.func @_copy_kernel(%arg0: i32, %arg1: memref<8x256xf32, #tpu.memory_space<vmem>>, %arg2: memref<8x256xf32, #tpu.memory_space<vmem>>) attributes {dimension_semantics = [#tpu.dimension_semantics<parallel>], iteration_bounds = array<i64: 1>, scalar_prefetch = 0 : i64, scratch_operands = 0 : i64, tpu.core_type = #tpu.core_type<tc>, window_params = [{transform_indices = @transform_0, window_bounds = array<i64: 8, 256>}, {transform_indices = @transform_1, window_bounds = array<i64: 8, 256>}]} {
    %c0 = arith.constant 0 : index
    %c0_0 = arith.constant 0 : index
    %0 = vector.load %arg1[%c0, %c0_0] : memref<8x256xf32, #tpu.memory_space<vmem>>, vector<8x256xf32>
    %c0_1 = arith.constant 0 : index
    %c0_2 = arith.constant 0 : index
    %1 = vector.load %arg2[%c0_1, %c0_2] : memref<8x256xf32, #tpu.memory_space<vmem>>, vector<8x256xf32>
    tpu.vector_store %arg2[%c0_1, %c0_2], %0 {strides = array<i32>} : memref<8x256xf32, #tpu.memory_space<vmem>>, vector<8x256xf32>,
    return
  }
  func.func @transform_0(%arg0: i32) -> (i32, i32) {
    %c0_i32 = arith.constant 0 : i32
    %c0_i32_0 = arith.constant 0 : i32
    return %arg0, %c0_i32 : i32, i32
  }
  func.func @transform_1(%arg0: i32) -> (i32, i32) {
    %c0_i32 = arith.constant 0 : i32
    %c0_i32_0 = arith.constant 0 : i32
    return %arg0, %c0_i32 : i32, i32
  }
}

</mosaic_0001>

<bundles_post_ra>
// kernel: custom_head_forward.1
= control target key start
LH: loop header
LB: loop body
LE: loop exit
PB: predicated region body
PF: predicated region fallthrough
CT: control target
= control target key end

     0   :  { %s38_s0 = inlined_call_operand.vmem [shape: f32[8,256], index: 0, kind: input, shape index: {}, may-alias: {0,1}]   ;;  %s39_s1 = inlined_call_operand.vmem [shape: f32[8,256], index: 1, kind: output, shape index: {}, may-alias: {0,1}]  }
   0x1   :  { %v8_v0 = vld [vmem:[%s38_s0] sm:$0xff]  ;;  %v9_v1 = vld [vmem:[%s38_s0 + $0x8] sm:$0xff] }
   0x2   :  { %10 = vst [vmem:[%s39_s1] sm:$0xff] %v8_v0  ;;  %11 = vst [vmem:[%s39_s1 + $0x8] sm:$0xff] %v9_v1 }

</bundles_post_ra>
